<compile_context>
chip_gen: v7x
topology: tpu7x:2x2x1
jax: 0.10.0
libtpu: 0.0.40
codegen_flags: <defaults>
</compile_context>

<pallas_src>
import jax
import jax.numpy as jnp
from jax.experimental import pallas as pl
from jax.experimental.pallas import tpu as pltpu


def _round_up(x, m):
    return ((x + m - 1) // m) * m


def _make_hidden_mlp_kernel(n_layers):
    """Fused (Linear -> ReLU) x n_layers kernel; weights arrive pre-transposed [in, out]."""

    def kernel(x_ref, *refs):
        feat_ref = refs[2 * n_layers]
        h = x_ref[...]                                   # [TB, D_in] (f32 or bf16)
        compute_dtype = h.dtype
        for i in range(n_layers):
            w = refs[2 * i][...]                         # [H_in, H_out] (pre-transposed)
            b = refs[2 * i + 1][...]                     # [1, H_out] f32
            h = jnp.dot(h, w, preferred_element_type=jnp.float32)   # MXU, native [M,K]x[K,N]
            h = jnp.maximum(h + b, 0.0)                  # bias + ReLU in f32 (Dropout = identity)
            if i + 1 < n_layers:
                h = h.astype(compute_dtype)              # feed next matmul at input precision
        feat_ref[...] = h.astype(feat_ref.dtype)

    return kernel


def _fc_classifier_xla(x, params):
    h = x
    for (w, b) in params[:-1]:
        h = jnp.maximum(h @ w.T + b, 0.0)
    w_o, b_o = params[-1]
    return h @ w_o.T + b_o, h


def fc_classifier(x, params, *, block_b=2048, compute_dtype=None, force_pallas=False):
    """
    x: [B, D_in].
    params: [(weight [out, in], bias [out]), ...] in PyTorch nn.Linear layout; hidden layers
            first, fc_out last.
    Returns (out [B, C], feat [B, H_last]) -- same as FcClassifier.forward.
    """
    B, d_in = x.shape
    n_hidden = len(params) - 1
    w_o, b_o = params[-1]

    # len(layers) == 0: module is Identity(), feat == x.
    if n_hidden == 0:
        return x @ w_o.T + b_o, x

    h_last = params[n_hidden - 1][0].shape[0]

    # Tiny problems: one fused XLA dot chain beats pallas_call fixed overhead + padding.
    work = B * sum(int(w.shape[0]) * int(w.shape[1]) for (w, _) in params)
    if not force_pallas and (B < 64 or work < (1 << 22)):
        return _fc_classifier_xla(x, params)

    # ---- batch tiling ----
    tb = min(_round_up(block_b, 8), _round_up(B, 8))
    if _round_up(B, tb) // tb < 2 and tb > 8:
        # ensure >= 2 grid steps so both v7x TensorCores get work
        tb = max(8, _round_up((B + 1) // 2, 8))
    b_pad = _round_up(B, tb)
    grid = (b_pad // tb,)

    x_dtype = x.dtype
    xc = x if compute_dtype is None else x.astype(compute_dtype)
    x_p = jnp.pad(xc, ((0, b_pad - B), (0, 0))) if b_pad != B else xc

    # ---- operands: batch-tiled x + VMEM-resident (pre-transposed) weights / biases ----
    flat_params = []
    in_specs = [pl.BlockSpec((tb, d_in), lambda i: (i, 0))]
    resident_bytes = 0
    for (w, b) in params[:-1]:
        out_dim = w.shape[0]
        wt = jnp.asarray(w).T                                   # [in, out]: one-time transpose
        if compute_dtype is not None:
            wt = wt.astype(compute_dtype)
        bb = jnp.asarray(b, jnp.float32).reshape(1, out_dim)
        flat_params += [wt, bb]
        # constant block index -> single-buffered, stays resident across the whole grid
        in_specs.append(pl.BlockSpec(wt.shape, lambda i: (0, 0),
                                     pipeline_mode=pl.Buffered(buffer_count=1)))
        in_specs.append(pl.BlockSpec(bb.shape, lambda i: (0, 0),
                                     pipeline_mode=pl.Buffered(buffer_count=1)))
        resident_bytes += wt.size * wt.dtype.itemsize + bb.size * bb.dtype.itemsize

    out_specs = pl.BlockSpec((tb, h_last), lambda i: (i, 0))
    out_shape = jax.ShapeDtypeStruct((b_pad, h_last), x_dtype)

    # ---- advisory cost + VMEM budget (padded batch) ----
    flops = 0
    prev = d_in
    for (w, _) in params[:-1]:
        flops += 2 * b_pad * prev * w.shape[0]
        prev = w.shape[0]
    bytes_accessed = int(x_p.size * x_p.dtype.itemsize + resident_bytes
                         + b_pad * h_last * jnp.dtype(x_dtype).itemsize)

    max_width = max([d_in] + [w.shape[0] for (w, _) in params[:-1]])
    vmem_need = (2 * tb * d_in * x_p.dtype.itemsize                 # x: double-buffered
                 + 2 * tb * h_last * jnp.dtype(x_dtype).itemsize    # feat: double-buffered
                 + resident_bytes                                   # weights/biases: 1 buffer
                 + 4 * tb * max_width * 4)                          # live f32 activation headroom
    vmem_limit = int(min(64 * 2**20, max(32 * 2**20, vmem_need * 3 // 2)))

    feat_p = pl.pallas_call(
        _make_hidden_mlp_kernel(n_hidden),
        grid=grid,
        out_shape=out_shape,
        in_specs=in_specs,
        out_specs=out_specs,
        compiler_params=pltpu.CompilerParams(
            dimension_semantics=("parallel",),      # megacore sharding on v7x; harmless elsewhere
            vmem_limit_bytes=vmem_limit),
        cost_estimate=pl.CostEstimate(
            flops=int(flops), transcendentals=0, bytes_accessed=bytes_accessed),
    )(x_p, *flat_params)

    feat = feat_p[:B]
    # fc_out (tiny output width) computed in the wrapper: avoids lane-sparse masked stores in the
    # kernel; this [B, H_last] x [H_last, C] matmul fuses cheaply in XLA.
    out = jnp.dot(feat.astype(jnp.float32), jnp.asarray(w_o).T.astype(jnp.float32),
                  preferred_element_type=jnp.float32) + jnp.asarray(b_o, jnp.float32)
    return out.astype(x_dtype), feat


def init_params(key, input_dim, layers, output_dim):
    """Deterministic synthetic init, PyTorch Linear shapes: weight [out, in], bias [out]."""
    dims = [input_dim] + list(layers)
    params = []
    for i in range(len(layers)):
        key, kw, kb = jax.random.split(key, 3)
        bound = 1.0 / float(dims[i]) ** 0.5
        w = jax.random.uniform(kw, (dims[i + 1], dims[i]), jnp.float32, -bound, bound)
        b = jax.random.uniform(kb, (dims[i + 1],), jnp.float32, -bound, bound)
        params.append((w, b))
    key, kw, kb = jax.random.split(key, 3)
    bound = 1.0 / float(dims[-1]) ** 0.5
    w = jax.random.uniform(kw, (output_dim, dims[-1]), jnp.float32, -bound, bound)
    b = jax.random.uniform(kb, (output_dim,), jnp.float32, -bound, bound)
    params.append((w, b))
    return params


if __name__ == "__main__":
    # FcClassifier(input_dim=32, layers=[64, 64], output_dim=4)
    input_dim, layers, output_dim = 32, (64, 64), 4

    key = jax.random.PRNGKey(0)
    kp, kx_small, kx_big = jax.random.split(key, 3)
    params = init_params(kp, input_dim, layers, output_dim)

    def reference(x):
        h = x
        for (w, b) in params[:-1]:
            h = jnp.maximum(h @ w.T + b, 0.0)
        w_o, b_o = params[-1]
        return h @ w_o.T + b_o, h

    # 1) Typical module usage (B=2): tiny problem -> automatic fused-XLA fallback.
    x_small = jax.random.normal(kx_small, (2, input_dim), dtype=jnp.float32)
    out_s, feat_s = fc_classifier(x_small, params)
    out_s, feat_s = jax.block_until_ready((out_s, feat_s))
    ro_s, rf_s = reference(x_small)
    assert out_s.shape == (2, output_dim) and feat_s.shape == (2, layers[-1])
    assert jnp.allclose(out_s, ro_s, atol=1e-5, rtol=1e-5)
    assert jnp.allclose(feat_s, rf_s, atol=1e-5, rtol=1e-5)

    # 2) Pallas kernel path (f32): forced, small batch -> 2 grid steps of 128 rows.
    x_big = jax.random.normal(kx_big, (256, input_dim), dtype=jnp.float32)
    out_b, feat_b = fc_classifier(x_big, params, force_pallas=True)
    out_b, feat_b = jax.block_until_ready((out_b, feat_b))
    ro_b, rf_b = reference(x_big)
    assert out_b.shape == (256, output_dim) and feat_b.shape == (256, layers[-1])
    assert jnp.allclose(out_b, ro_b, atol=1e-4, rtol=1e-4)
    assert jnp.allclose(feat_b, rf_b, atol=1e-4, rtol=1e-4)

    # 3) Pallas kernel path with bf16 matmul inputs (v6e/v7x stream-halving option).
    out_h, feat_h = fc_classifier(x_big, params, force_pallas=True,
                                  compute_dtype=jnp.bfloat16)
    out_h, feat_h = jax.block_until_ready((out_h, feat_h))
    assert jnp.allclose(out_h, ro_b, atol=5e-2, rtol=5e-2)
    assert jnp.allclose(feat_h, rf_b, atol=5e-2, rtol=5e-2)

    print("KERNEL_OK")
</pallas_src>

<mosaic_0001>
module attributes {stable_mosaic.version = 11 : i64} {
  func.func @kernel(%arg0: i32, %arg1: memref<128x32xf32, #tpu.memory_space<vmem>>, %arg2: memref<32x64xf32, #tpu.memory_space<vmem>>, %arg3: memref<1x64xf32, #tpu.memory_space<vmem>>, %arg4: memref<64x64xf32, #tpu.memory_space<vmem>>, %arg5: memref<1x64xf32, #tpu.memory_space<vmem>>, %arg6: memref<128x64xf32, #tpu.memory_space<vmem>>) attributes {dimension_semantics = [#tpu.dimension_semantics<parallel>], iteration_bounds = array<i64: 2>, scalar_prefetch = 0 : i64, scratch_operands = 0 : i64, tpu.core_type = #tpu.core_type<tc>, window_params = [{transform_indices = @transform_0, window_bounds = array<i64: 128, 32>}, {pipeline_mode = #tpu.pipeline_mode<synchronous>, transform_indices = @transform_1, window_bounds = array<i64: 32, 64>}, {pipeline_mode = #tpu.pipeline_mode<synchronous>, transform_indices = @transform_2, window_bounds = array<i64: 1, 64>}, {pipeline_mode = #tpu.pipeline_mode<synchronous>, transform_indices = @transform_3, window_bounds = array<i64: 64, 64>}, {pipeline_mode = #tpu.pipeline_mode<synchronous>, transform_indices = @transform_4, window_bounds = array<i64: 1, 64>}, {transform_indices = @transform_5, window_bounds = array<i64: 128, 64>}]} {
    %c0 = arith.constant 0 : index
    %c0_0 = arith.constant 0 : index
    %0 = vector.load %arg1[%c0, %c0_0] : memref<128x32xf32, #tpu.memory_space<vmem>>, vector<128x32xf32>
    %c0_1 = arith.constant 0 : index
    %c0_2 = arith.constant 0 : index
    %1 = vector.load %arg2[%c0_1, %c0_2] : memref<32x64xf32, #tpu.memory_space<vmem>>, vector<32x64xf32>
    %c0_3 = arith.constant 0 : index
    %c0_4 = arith.constant 0 : index
    %2 = vector.load %arg3[%c0_3, %c0_4] : memref<1x64xf32, #tpu.memory_space<vmem>>, vector<1x64xf32>
    %cst = arith.constant dense<0.000000e+00> : vector<128x64xf32>
    %3 = tpu.matmul %0, %1, %cst {dimension_numbers = #tpu.dot_dimension_numbers<[1], [0], [0], [1], [0, 0, 1, 1], [], []>} : vector<128x32xf32>, vector<32x64xf32>, vector<128x64xf32> -> vector<128x64xf32>
    %4 = vector.broadcast %2 : vector<1x64xf32> to vector<128x64xf32>
    %5 = arith.addf %3, %4 : vector<128x64xf32>
    %cst_5 = arith.constant 0.000000e+00 : f32
    %6 = vector.broadcast %cst_5 : f32 to vector<128x64xf32>
    %7 = arith.maximumf %5, %6 : vector<128x64xf32>
    %c0_6 = arith.constant 0 : index
    %c0_7 = arith.constant 0 : index
    %8 = vector.load %arg4[%c0_6, %c0_7] : memref<64x64xf32, #tpu.memory_space<vmem>>, vector<64x64xf32>
    %c0_8 = arith.constant 0 : index
    %c0_9 = arith.constant 0 : index
    %9 = vector.load %arg5[%c0_8, %c0_9] : memref<1x64xf32, #tpu.memory_space<vmem>>, vector<1x64xf32>
    %cst_10 = arith.constant dense<0.000000e+00> : vector<128x64xf32>
    %10 = tpu.matmul %7, %8, %cst_10 {dimension_numbers = #tpu.dot_dimension_numbers<[1], [0], [0], [1], [0, 0, 1, 1], [], []>} : vector<128x64xf32>, vector<64x64xf32>, vector<128x64xf32> -> vector<128x64xf32>
    %11 = vector.broadcast %9 : vector<1x64xf32> to vector<128x64xf32>
    %12 = arith.addf %10, %11 : vector<128x64xf32>
    %cst_11 = arith.constant 0.000000e+00 : f32
    %13 = vector.broadcast %cst_11 : f32 to vector<128x64xf32>
    %14 = arith.maximumf %12, %13 : vector<128x64xf32>
    %c0_12 = arith.constant 0 : index
    %c0_13 = arith.constant 0 : index
    %15 = vector.load %arg6[%c0_12, %c0_13] : memref<128x64xf32, #tpu.memory_space<vmem>>, vector<128x64xf32>
    tpu.vector_store %arg6[%c0_12, %c0_13], %14 {strides = array<i32>} : memref<128x64xf32, #tpu.memory_space<vmem>>, vector<128x64xf32>,
    return
  }
  func.func @transform_0(%arg0: i32) -> (i32, i32) {
    %c0_i32 = arith.constant 0 : i32
    %c0_i32_0 = arith.constant 0 : i32
    return %arg0, %c0_i32 : i32, i32
  }
  func.func @transform_1(%arg0: i32) -> (i32, i32) {
    %c0_i32 = arith.constant 0 : i32
    %c0_i32_0 = arith.constant 0 : i32
    %c0_i32_1 = arith.constant 0 : i32
    return %c0_i32, %c0_i32_0 : i32, i32
  }
  func.func @transform_2(%arg0: i32) -> (i32, i32) {
    %c0_i32 = arith.constant 0 : i32
    %c0_i32_0 = arith.constant 0 : i32
    %c0_i32_1 = arith.constant 0 : i32
    return %c0_i32, %c0_i32_0 : i32, i32
  }
  func.func @transform_3(%arg0: i32) -> (i32, i32) {
    %c0_i32 = arith.constant 0 : i32
    %c0_i32_0 = arith.constant 0 : i32
    %c0_i32_1 = arith.constant 0 : i32
    return %c0_i32, %c0_i32_0 : i32, i32
  }
  func.func @transform_4(%arg0: i32) -> (i32, i32) {
    %c0_i32 = arith.constant 0 : i32
    %c0_i32_0 = arith.constant 0 : i32
    %c0_i32_1 = arith.constant 0 : i32
    return %c0_i32, %c0_i32_0 : i32, i32
  }
  func.func @transform_5(%arg0: i32) -> (i32, i32) {
    %c0_i32 = arith.constant 0 : i32
    %c0_i32_0 = arith.constant 0 : i32
    return %arg0, %c0_i32 : i32, i32
  }
}

</mosaic_0001>

<bundles_post_ra>
// kernel: tpu_custom_call.1
= control target key start
LH: loop header
LB: loop body
LE: loop exit
PB: predicated region body
PF: predicated region fallthrough
CT: control target
= control target key end

     0   :  { %s1001_s18 = smov 0   ;;  %s1151_s0 = inlined_call_operand.vmem [shape: f32[256,32], index: 0, kind: input, shape index: {}]   ;;  %s1152_s1 = inlined_call_operand.vmem [shape: f32[32,64], index: 1, kind: input, shape index: {}]   ;;  %s1153_s2 = inlined_call_operand.vmem [shape: f32[1,64], index: 2, kind: input, shape index: {}]   ;;  %s1154_s3 = inlined_call_operand.vmem [shape: f32[64,64], index: 3, kind: input, shape index: {}]   ;;  %s1155_s4 = inlined_call_operand.vmem [shape: f32[1,64], index: 4, kind: input, shape index: {}]   ;;  %s1156_s5 = inlined_call_operand.vmem [shape: f32[256,64], index: 5, kind: output, shape index: {}]  }
   0x1 LB: > { %s762_s19 = sadd.s32 4294967295, %s969_s18   ;;  %p766_p0 = scmp.ge.s32.totalorder %s969_s18, 1  ;;  %s969_s18 = sphi %s1001_s18, %s15_s18  }
   0x2   : > { %p188_p1 = scmp.lt.s32.totalorder %s969_s18, 3 }
   0x4   : > { %p189_p2 = pnand %p766_p0, %p188_p1 }
   0x5   : > { %v244_v0 = vld [vmem:[%s1152_s1] sm:$0xff] (!%p189_p2)  ;;  %v245_v1 = vld [vmem:[%s1152_s1 + $0x8] sm:$0xff] (!%p189_p2)  ;;  %v246_v2 = vld [vmem:[%s1152_s1 + $0x10] sm:$0xff] (!%p189_p2)  ;;  %s767_s26 = sshll.u32 (!%p189_p2), %s762_s19, 4  ;;  %vm255_vm0 = vcmask (!%p189_p2), 261120   ;;  %vm480_vm1 = vcmask (!%p189_p2), 523264  }
   0x6   : > { %192 = sbr.rel (%p189_p2) target bundleno = 482 (0x1e2), region = 40  ;;  %v923_v3 = vpack.c.bf16 (!%p189_p2), %v245_v1, %v244_v0  ;;  %v247_v4 = vld [vmem:[%s1152_s1 + $0x18] sm:$0xff] (!%p189_p2)  ;;  %p217_p3 = scmp.lt.s32.totalorder (!%p189_p2), %s767_s26, 31  ;;  %v465_v5 = vld [vmem:[%s1154_s3] sm:$0xff] (!%p189_p2)  ;;  %v466_v6 = vld [vmem:[%s1154_s3 + $0x8] sm:$0xff] (!%p189_p2) }
   0x7   : > { %v927_v7 = vpack.c.bf16 (!%p189_p2), %v247_v4, %v246_v2  ;;  %v931_v8 = vpack.c.bf16 (!%p189_p2), %v466_v6, %v465_v5  ;;  %v467_v9 = vld [vmem:[%s1154_s3 + $0x10] sm:$0xff] (!%p189_p2)  ;;  %v468_v10 = vld [vmem:[%s1154_s3 + $0x18] sm:$0xff] (!%p189_p2)  ;;  %v469_v12 = vld [vmem:[%s1154_s3 + $0x20] sm:$0xff] (!%p189_p2) }
   0x8   : > { %924 = vmatprep.subr.bf16.mxu0 (!%p189_p2), %v923_v3  ;;  %v935_v11 = vpack.c.bf16 (!%p189_p2), %v468_v10, %v467_v9  ;;  %v470_v13 = vld [vmem:[%s1154_s3 + $0x28] sm:$0xff] (!%p189_p2)  ;;  %v471_v31 = vld [vmem:[%s1154_s3 + $0x30] sm:$0xff] (!%p189_p2)  ;;  %v472_v32 = vld [vmem:[%s1154_s3 + $0x38] sm:$0xff] (!%p189_p2) }
   0x9   : > { %926 = vmatpush3.bf16.msra.mxu0 (!%p189_p2), %v923_v3  ;;  %947 = vmatprep.subr.bf16.mxu1 (!%p189_p2), %v931_v8  ;;  %v939_v16 = vpack.c.bf16 (!%p189_p2), %v470_v13, %v469_v12  ;;  %v943_v33 = vpack.c.bf16 (!%p189_p2), %v472_v32, %v471_v31  ;;  %v771_v34 = vld [vmem:[%s1153_s2] ss:$0 sm:$0xff] (!%p189_p2) }
   0xa   : > { %928 = vmatprep.subr.bf16.mxu0 (!%p189_p2), %v927_v7  ;;  %951 = vmatpush3.bf16.msra.mxu1 (!%p189_p2), %v931_v8 }
   0xb   : > { %948 = vmatprep.subr.bf16.mxu1 (!%p189_p2), %v935_v11 }
   0xd   : > { %s1158_s26 = smov (!%p217_p3, %s767_s26), 31  ;;  %930 = vmatpush3.bf16.msra.mxu0 %v927_v7 }
   0xe   : > { %s768_s12 = sshll.u32 %s1158_s26, 3  ;;  %932 = vmatprep.subr.bf16.mxu0 %v931_v8  ;;  %952 = vmatpush3.bf16.msra.mxu1 %v935_v11 }
   0xf   : > { %s1047_s20 = scalar_lea.vmem %s1151_s0, %s768_s12  ;;  %949 = vmatprep.subr.bf16.mxu1 %v939_v16  ;;  %s1114_s7 = scalar_lea.vmem %s1156_s5, %s768_s12 }
  0x10   : > { %v228_v14 = vld [vmem:[%s1047_s20] sm:$0xff]  ;;  %v229_v15 = vld [vmem:[%s1047_s20 + $0x8] sm:$0xff]  ;;  %v230_v17 = vld [vmem:[%s1047_s20 + $0x10] sm:$0xff] }
  0x11   : > { %859 = vmatprep.mubr.msk.f32.mxu0 %vm255_vm0, %v228_v14  ;;  %v231_v18 = vld [vmem:[%s1047_s20 + $0x18] sm:$0xff]  ;;  %v232_v19 = vld [vmem:[%s1047_s20 + $0x20] sm:$0xff]  ;;  %v233_v20 = vld [vmem:[%s1047_s20 + $0x28] sm:$0xff] }
  0x12   : > { %860 = vmatmul.mubr.msk.f32.vlgmr.msra.gmra.mrb[0].mxu0 %vm255_vm0, %v229_v15  ;;  %953 = vmatpush3.bf16.msra.mxu1 %v939_v16  ;;  %v234_v21 = vld [vmem:[%s1047_s20 + $0x30] sm:$0xff]  ;;  %v235_v22 = vld [vmem:[%s1047_s20 + $0x38] sm:$0xff]  ;;  %v236_v23 = vld [vmem:[%s1047_s20 + $0x40] sm:$0xff] }
  0x13   : > { %862 = vmatprep.mubr.msk.f32.mxu0 %vm255_vm0, %v230_v17  ;;  %934 = vmatpush3.bf16.msra.mxu0 %v931_v8  ;;  %v237_v24 = vld [vmem:[%s1047_s20 + $0x48] sm:$0xff]  ;;  %v238_v25 = vld [vmem:[%s1047_s20 + $0x50] sm:$0xff]  ;;  %v239_v26 = vld [vmem:[%s1047_s20 + $0x58] sm:$0xff] }
  0x14   : > { %936 = vmatprep.subr.bf16.mxu0 %v935_v11  ;;  %v240_v27 = vld [vmem:[%s1047_s20 + $0x60] sm:$0xff]  ;;  %v241_v28 = vld [vmem:[%s1047_s20 + $0x68] sm:$0xff]  ;;  %v242_v29 = vld [vmem:[%s1047_s20 + $0x70] sm:$0xff]  ;;  %950 = vmatprep.subr.bf16.mxu1 %v943_v33 }
  0x15   : > { %v243_v30 = vld [vmem:[%s1047_s20 + $0x78] sm:$0xff] }
  0x16   : > { %863 = vmatmul.mubr.msk.f32.gmra.mrb[2].mxu0 %vm255_vm0, %v231_v18  ;;  %954 = vmatpush3.bf16.msra.mxu1 %v943_v33 }
  0x17   : > { %865 = vmatprep.mubr.msk.f32.mxu0 %vm255_vm0, %v232_v19  ;;  %938 = vmatpush3.bf16.msra.mxu0 %v935_v11  ;;  %v788_v19 = vld [vmem:[%s1155_s4] ss:$0 sm:$0xff] }
  0x18   : > { %940 = vmatprep.subr.bf16.mxu0 %v939_v16 }
  0x1a   : > { %866 = vmatmul.mubr.msk.f32.gmra.mrb[4].mxu0 %vm255_vm0, %v233_v20 }
  0x1b   : > { %868 = vmatprep.mubr.msk.f32.mxu0 %vm255_vm0, %v234_v21  ;;  %942 = vmatpush3.bf16.msra.mxu0 %v939_v16 }
  0x1c   : > { %944 = vmatprep.subr.bf16.mxu0 %v943_v33 }
  0x1e   : > { %869 = vmatmul.mubr.msk.f32.gmra.mrb[6].mxu0 %vm255_vm0, %v235_v22 }
  0x1f   : > { %871 = vmatprep.mubr.msk.f32.mxu0 %vm255_vm0, %v236_v23  ;;  %946 = vmatpush3.bf16.msra.mxu0 %v943_v33 }
  0x22   : > { %872 = vmatmul.mubr.msk.f32.gmra.mrb[8].mxu0 %vm255_vm0, %v237_v24 }
  0x23   : > { %874 = vmatprep.mubr.msk.f32.mxu0 %vm255_vm0, %v238_v25 }
  0x26   : > { %875 = vmatmul.mubr.msk.f32.gmra.mrb[10].mxu0 %vm255_vm0, %v239_v26 }
  0x27   : > { %877 = vmatprep.mubr.msk.f32.mxu0 %vm255_vm0, %v240_v27 }
  0x2a   : > { %878 = vmatmul.mubr.msk.f32.gmra.mrb[12].mxu0 %vm255_vm0, %v241_v28 }
  0x2b   : > { %880 = vmatprep.mubr.msk.f32.mxu0 %vm255_vm0, %v242_v29 }
  0x2e   : > { %881 = vmatmul.mubr.msk.f32.gmra.mrb[14].mxu0 %vm255_vm0, %v243_v30 }
  0xe5   : > { %v861_v35 = vpop.f32.mrb[0].mxu0 }
  0xe6   : > { %v376_v36 = vadd.f32 %v861_v35, %v771_v34  ;;  %v370_v37 = vpop.f32.mrb[1].mxu0 }
  0xe7   : > { %v371_v38 = vadd.f32 %v771_v34, %v370_v37 }
  0xe8   : > { %v450_v41 = vmax.f32 %v376_v36, 0.0 }
  0xe9   : > { %v449_v39 = vmax.f32 %v371_v38, 0.0  ;;  %v864_v40 = vpop.f32.mrb[2].mxu0 }
  0xea   : > { %v386_v42 = vadd.f32 %v864_v40, %v771_v34  ;;  %v380_v43 = vpop.f32.mrb[3].mxu0 }
  0xeb   : > { %v381_v44 = vadd.f32 %v771_v34, %v380_v43  ;;  %899 = vmatprep.mubr.msk.f32.mxu0 %vm480_vm1, %v449_v39 }
  0xec   : > { %900 = vmatmul.mubr.msk.f32.vlgmr.msra.gmra.mrb[16].mxu0 %vm480_vm1, %v450_v41  ;;  %v452_v47 = vmax.f32 %v386_v42, 0.0 }
  0xed   : > { %v451_v45 = vmax.f32 %v381_v44, 0.0  ;;  %v867_v46 = vpop.f32.mrb[4].mxu0 }
  0xee   : > { %v396_v48 = vadd.f32 %v867_v46, %v771_v34  ;;  %v390_v49 = vpop.f32.mrb[5].mxu0 }
  0xef   : > { %v391_v50 = vadd.f32 %v771_v34, %v390_v49  ;;  %902 = vmatprep.mubr.msk.f32.mxu1 %vm480_vm1, %v451_v45 }
  0xf0   : > { %903 = vmatmul.mubr.msk.f32.vlgmr.msra.gmra.mrb[0].mxu1 %vm480_vm1, %v452_v47  ;;  %v454_v53 = vmax.f32 %v396_v48, 0.0 }
  0xf1   : > { %v453_v51 = vmax.f32 %v391_v50, 0.0  ;;  %v870_v52 = vpop.f32.mrb[6].mxu0 }
  0xf2   : > { %v406_v54 = vadd.f32 %v870_v52, %v771_v34  ;;  %v400_v55 = vpop.f32.mrb[7].mxu0 }
  0xf3   : > { %v401_v56 = vadd.f32 %v771_v34, %v400_v55  ;;  %905 = vmatprep.mubr.msk.f32.mxu1 %vm480_vm1, %v453_v51 }
  0xf4   : > { %906 = vmatmul.mubr.msk.f32.gmra.mrb[2].mxu1 %vm480_vm1, %v454_v53  ;;  %v456_v59 = vmax.f32 %v406_v54, 0.0 }
  0xf5   : > { %v455_v57 = vmax.f32 %v401_v56, 0.0  ;;  %v873_v58 = vpop.f32.mrb[8].mxu0 }
  0xf6   : > { %v416_v60 = vadd.f32 %v873_v58, %v771_v34  ;;  %v410_v61 = vpop.f32.mrb[9].mxu0 }
  0xf7   : > { %v411_v62 = vadd.f32 %v771_v34, %v410_v61  ;;  %908 = vmatprep.mubr.msk.f32.mxu1 %vm480_vm1, %v455_v57 }
  0xf8   : > { %909 = vmatmul.mubr.msk.f32.gmra.mrb[4].mxu1 %vm480_vm1, %v456_v59  ;;  %v458_v1 = vmax.f32 %v416_v60, 0.0 }
  0xf9   : > { %v457_v63 = vmax.f32 %v411_v62, 0.0  ;;  %v876_v0 = vpop.f32.mrb[10].mxu0 }
  0xfa   : > { %v426_v2 = vadd.f32 %v876_v0, %v771_v34  ;;  %v420_v3 = vpop.f32.mrb[11].mxu0 }
  0xfb   : > { %v421_v4 = vadd.f32 %v771_v34, %v420_v3  ;;  %911 = vmatprep.mubr.msk.f32.mxu1 %vm480_vm1, %v457_v63 }
  0xfc   : > { %912 = vmatmul.mubr.msk.f32.gmra.mrb[6].mxu1 %vm480_vm1, %v458_v1  ;;  %v460_v7 = vmax.f32 %v426_v2, 0.0 }
  0xfd   : > { %v459_v5 = vmax.f32 %v421_v4, 0.0  ;;  %v879_v6 = vpop.f32.mrb[12].mxu0 }
  0xfe   : > { %v436_v8 = vadd.f32 %v879_v6, %v771_v34  ;;  %v430_v9 = vpop.f32.mrb[13].mxu0 }
  0xff   : > { %v431_v10 = vadd.f32 %v771_v34, %v430_v9  ;;  %914 = vmatprep.mubr.msk.f32.mxu1 %vm480_vm1, %v459_v5 }
 0x100   : > { %915 = vmatmul.mubr.msk.f32.gmra.mrb[8].mxu1 %vm480_vm1, %v460_v7  ;;  %v462_v13 = vmax.f32 %v436_v8, 0.0 }
 0x101   : > { %v461_v11 = vmax.f32 %v431_v10, 0.0  ;;  %v882_v12 = vpop.f32.mrb[14].mxu0 }
 0x102   : > { %v446_v14 = vadd.f32 %v882_v12, %v771_v34  ;;  %v440_v15 = vpop.f32.mrb[15].mxu0 }
 0x103   : > { %v441_v16 = vadd.f32 %v771_v34, %v440_v15  ;;  %917 = vmatprep.mubr.msk.f32.mxu1 %vm480_vm1, %v461_v11 }
 0x104   : > { %918 = vmatmul.mubr.msk.f32.gmra.mrb[10].mxu1 %vm480_vm1, %v462_v13  ;;  %v464_v18 = vmax.f32 %v446_v14, 0.0 }
 0x105   : > { %v463_v17 = vmax.f32 %v441_v16, 0.0 }
 0x107   : > { %920 = vmatprep.mubr.msk.f32.mxu1 %vm480_vm1, %v463_v17 }
 0x108   : > { %921 = vmatmul.mubr.msk.f32.gmra.mrb[12].mxu1 %vm480_vm1, %v464_v18 }
 0x1bf   : > { %v901_v20 = vpop.f32.mrb[16].mxu0 }
 0x1c0   : > { %v601_v21 = vadd.f32 %v901_v20, %v788_v19  ;;  %v595_v22 = vpop.f32.mrb[17].mxu0 }
 0x1c1   : > { %v596_v23 = vadd.f32 %v788_v19, %v595_v22 }
 0x1c2   : > { %v675_v24 = vmax.f32 %v601_v21, 0.0 }
 0x1c3   : > { %v674_v25 = vmax.f32 %v596_v23, 0.0  ;;  %v904_v26 = vpop.f32.mrb[0].mxu1 }
 0x1c4   : > { %691 = vst.msk [vmem:[%s1114_s7 + $0x8] sm:$0xff] %vm480_vm1, %v675_v24  ;;  %v611_v27 = vadd.f32 %v904_v26, %v788_v19  ;;  %v605_v28 = vpop.f32.mrb[1].mxu1 }
 0x1c5   : > { %690 = vst.msk [vmem:[%s1114_s7] sm:$0xff] %vm480_vm1, %v674_v25  ;;  %v606_v29 = vadd.f32 %v788_v19, %v605_v28 }
 0x1c6   : > { %v677_v30 = vmax.f32 %v611_v27, 0.0 }
 0x1c7   : > { %v676_v31 = vmax.f32 %v606_v29, 0.0  ;;  %v907_v32 = vpop.f32.mrb[2].mxu1 }
 0x1c8   : > { %693 = vst.msk [vmem:[%s1114_s7 + $0x18] sm:$0xff] %vm480_vm1, %v677_v30  ;;  %v621_v33 = vadd.f32 %v907_v32, %v788_v19  ;;  %v615_v34 = vpop.f32.mrb[3].mxu1 }
 0x1c9   : > { %692 = vst.msk [vmem:[%s1114_s7 + $0x10] sm:$0xff] %vm480_vm1, %v676_v31  ;;  %v616_v35 = vadd.f32 %v788_v19, %v615_v34 }
 0x1ca   : > { %v679_v36 = vmax.f32 %v621_v33, 0.0 }
 0x1cb   : > { %v678_v37 = vmax.f32 %v616_v35, 0.0  ;;  %v910_v38 = vpop.f32.mrb[4].mxu1 }
 0x1cc   : > { %695 = vst.msk [vmem:[%s1114_s7 + $0x28] sm:$0xff] %vm480_vm1, %v679_v36  ;;  %v631_v39 = vadd.f32 %v910_v38, %v788_v19  ;;  %v625_v40 = vpop.f32.mrb[5].mxu1 }
 0x1cd   : > { %694 = vst.msk [vmem:[%s1114_s7 + $0x20] sm:$0xff] %vm480_vm1, %v678_v37  ;;  %v626_v41 = vadd.f32 %v788_v19, %v625_v40 }
 0x1ce   : > { %v681_v42 = vmax.f32 %v631_v39, 0.0 }
 0x1cf   : > { %v680_v43 = vmax.f32 %v626_v41, 0.0  ;;  %v913_v44 = vpop.f32.mrb[6].mxu1 }
 0x1d0   : > { %697 = vst.msk [vmem:[%s1114_s7 + $0x38] sm:$0xff] %vm480_vm1, %v681_v42  ;;  %v641_v45 = vadd.f32 %v913_v44, %v788_v19  ;;  %v635_v46 = vpop.f32.mrb[7].mxu1 }
 0x1d1   : > { %696 = vst.msk [vmem:[%s1114_s7 + $0x30] sm:$0xff] %vm480_vm1, %v680_v43  ;;  %v636_v47 = vadd.f32 %v788_v19, %v635_v46 }
 0x1d2   : > { %v683_v48 = vmax.f32 %v641_v45, 0.0 }
 0x1d3   : > { %v682_v49 = vmax.f32 %v636_v47, 0.0  ;;  %v916_v50 = vpop.f32.mrb[8].mxu1 }
 0x1d4   : > { %699 = vst.msk [vmem:[%s1114_s7 + $0x48] sm:$0xff] %vm480_vm1, %v683_v48  ;;  %v651_v51 = vadd.f32 %v916_v50, %v788_v19  ;;  %v645_v52 = vpop.f32.mrb[9].mxu1 }
 0x1d5   : > { %698 = vst.msk [vmem:[%s1114_s7 + $0x40] sm:$0xff] %vm480_vm1, %v682_v49  ;;  %v646_v53 = vadd.f32 %v788_v19, %v645_v52 }
 0x1d6   : > { %v685_v54 = vmax.f32 %v651_v51, 0.0 }
 0x1d7   : > { %v684_v55 = vmax.f32 %v646_v53, 0.0  ;;  %v919_v56 = vpop.f32.mrb[10].mxu1 }
 0x1d8   : > { %701 = vst.msk [vmem:[%s1114_s7 + $0x58] sm:$0xff] %vm480_vm1, %v685_v54  ;;  %v661_v57 = vadd.f32 %v919_v56, %v788_v19  ;;  %v655_v58 = vpop.f32.mrb[11].mxu1 }
 0x1d9   : > { %700 = vst.msk [vmem:[%s1114_s7 + $0x50] sm:$0xff] %vm480_vm1, %v684_v55  ;;  %v656_v59 = vadd.f32 %v788_v19, %v655_v58 }
 0x1da   : > { %v687_v60 = vmax.f32 %v661_v57, 0.0 }
 0x1db   : > { %v686_v61 = vmax.f32 %v656_v59, 0.0  ;;  %v922_v62 = vpop.f32.mrb[12].mxu1 }
 0x1dc   : > { %703 = vst.msk [vmem:[%s1114_s7 + $0x68] sm:$0xff] %vm480_vm1, %v687_v60  ;;  %v671_v63 = vadd.f32 %v922_v62, %v788_v19  ;;  %v665_v0 = vpop.f32.mrb[13].mxu1 }
 0x1dd   : > { %702 = vst.msk [vmem:[%s1114_s7 + $0x60] sm:$0xff] %vm480_vm1, %v686_v61  ;;  %v666_v1 = vadd.f32 %v788_v19, %v665_v0 }
 0x1de   : > { %v689_v2 = vmax.f32 %v671_v63, 0.0 }
 0x1df   : > { %v688_v3 = vmax.f32 %v666_v1, 0.0 }
 0x1e0   : > { %705 = vst.msk [vmem:[%s1114_s7 + $0x78] sm:$0xff] %vm480_vm1, %v689_v2 }
 0x1e1   : > { %704 = vst.msk [vmem:[%s1114_s7 + $0x70] sm:$0xff] %vm480_vm1, %v688_v3 }
 0x1e2 PF: > { %s15_s18 = sadd.s32 1, %s969_s18  }
 0x1e3   : > { %p12_p4 = scmp.ge.s32.totalorder %s15_s18, 4  }
 0x1e5   :  { %14 = sbr.rel (!%p12_p4) target bundleno = 1 (0x1), region = 70 }

</bundles_post_ra>
